<compile_context>
chip_gen: v7x
topology: tpu7x:2x2x1
jax: 0.10.0
libtpu: 0.0.40
codegen_flags: <defaults>
</compile_context>

<pallas_src>
import jax
import jax.numpy as jnp
from jax.experimental import pallas as pl
from jax.experimental.pallas import tpu as pltpu

LANES = 128
MAX_BLOCK_ROWS = 1024  # (1024, 128) f32 tile = 512 KiB; sweet spot per v6e roofline data


def _neg_sum_kernel(x_ref, acc_ref):
    """Accumulate -x into the resident output block across the inner grid axis."""
    j = pl.program_id(1)

    @pl.when(j == 0)
    def _():
        acc_ref[...] = jnp.zeros_like(acc_ref)

    # Pure VPU elementwise work per step; no cross-lane reduce, no SMEM RMW.
    acc_ref[...] -= x_ref[...].astype(jnp.float32)


def my_loss(output):
    """sum(-1.0 * output), matching torch.sum(-1.0 * output)."""
    x = jnp.ravel(output)
    n = x.size
    if n == 0:
        return jnp.float32(0.0)

    # Tiny or lane-ragged inputs: a fused XLA reduction beats kernel-launch +
    # layout-copy overhead (per perf review). The test shape below takes the
    # Pallas path.
    if (n % LANES != 0) or (n < 8 * LANES):
        return jnp.sum(-1.0 * x.astype(jnp.float32))

    rows = n // LANES
    x2d = x.reshape(rows, LANES)  # contiguous flatten+reshape: free bitcast, no HBM copy

    # Largest tile that fits comfortably in VMEM on all generations (incl. v7x).
    block_rows = min(MAX_BLOCK_ROWS, (rows // 8) * 8)  # multiple of 8 (f32 sublane tile)
    num_blocks = rows // block_rows

    # Split the block range across the two v7x TensorCores when possible.
    num_splits = 2 if num_blocks >= 2 else 1
    num_blocks = (num_blocks // num_splits) * num_splits
    steps = num_blocks // num_splits
    rows_main = num_blocks * block_rows

    partials = pl.pallas_call(
        _neg_sum_kernel,
        out_shape=jax.ShapeDtypeStruct((num_splits * block_rows, LANES), jnp.float32),
        grid_spec=pltpu.PrefetchScalarGridSpec(
            num_scalar_prefetch=0,
            grid=(num_splits, steps),
            in_specs=[
                pl.BlockSpec((block_rows, LANES), lambda s, j: (s * steps + j, 0)),
            ],
            # Output block index constant along the reduction axis j -> resident
            # VMEM accumulator; disjoint block per split s.
            out_specs=pl.BlockSpec((block_rows, LANES), lambda s, j: (s, 0)),
        ),
        compiler_params=pltpu.CompilerParams(
            dimension_semantics=("parallel", "arbitrary"),
        ),
    )(x2d)

    total = jnp.sum(partials)  # final cross-lane reduce over <= 1 MiB of partials

    # Row tail not covered by whole blocks: reduce with plain jnp (small slice).
    if rows_main < rows:
        total = total + jnp.sum(-1.0 * x2d[rows_main:, :].astype(jnp.float32))
    return total


if __name__ == "__main__":
    key = jax.random.PRNGKey(0)
    # Small NCHW activation tensor consistent with the module's usage.
    shape = (2, 4, 16, 16)
    output = jax.random.normal(key, shape, dtype=jnp.float32)

    loss = my_loss(output)
    jax.block_until_ready(loss)

    ref = jnp.sum(-1.0 * output)
    assert jnp.allclose(loss, ref, rtol=1e-5, atol=1e-5), (loss, ref)

    print("KERNEL_OK")
</pallas_src>

<mosaic_0001>
module attributes {stable_mosaic.version = 11 : i64} {
  func.func @_neg_sum_kernel(%arg0: i32, %arg1: i32, %arg2: memref<16x128xf32, #tpu.memory_space<vmem>>, %arg3: memref<16x128xf32, #tpu.memory_space<vmem>>) attributes {dimension_semantics = [#tpu.dimension_semantics<parallel>, #tpu.dimension_semantics<arbitrary>], iteration_bounds = array<i64: 1, 1>, scalar_prefetch = 0 : i64, scratch_operands = 0 : i64, tpu.core_type = #tpu.core_type<tc>, window_params = [{transform_indices = @transform_0, window_bounds = array<i64: 16, 128>}, {transform_indices = @transform_1, window_bounds = array<i64: 16, 128>}]} {
    %c0_i32 = arith.constant 0 : i32
    %0 = arith.cmpi eq, %arg1, %c0_i32 : i32
    %1 = arith.extui %0 : i1 to i32
    %c0_i32_0 = arith.constant 0 : i32
    %2 = arith.cmpi ne, %1, %c0_i32_0 : i32
    scf.if %2 {
      %cst = arith.constant 0.000000e+00 : f32
      %7 = vector.broadcast %cst : f32 to vector<16x128xf32>
      %c0_6 = arith.constant 0 : index
      %c0_7 = arith.constant 0 : index
      %8 = vector.load %arg3[%c0_6, %c0_7] : memref<16x128xf32, #tpu.memory_space<vmem>>, vector<16x128xf32>
      tpu.vector_store %arg3[%c0_6, %c0_7], %7 {strides = array<i32>} : memref<16x128xf32, #tpu.memory_space<vmem>>, vector<16x128xf32>,
    } else {
    }
    %c0 = arith.constant 0 : index
    %c0_1 = arith.constant 0 : index
    %3 = vector.load %arg3[%c0, %c0_1] : memref<16x128xf32, #tpu.memory_space<vmem>>, vector<16x128xf32>
    %c0_2 = arith.constant 0 : index
    %c0_3 = arith.constant 0 : index
    %4 = vector.load %arg2[%c0_2, %c0_3] : memref<16x128xf32, #tpu.memory_space<vmem>>, vector<16x128xf32>
    %5 = arith.subf %3, %4 : vector<16x128xf32>
    %c0_4 = arith.constant 0 : index
    %c0_5 = arith.constant 0 : index
    %6 = vector.load %arg3[%c0_4, %c0_5] : memref<16x128xf32, #tpu.memory_space<vmem>>, vector<16x128xf32>
    tpu.vector_store %arg3[%c0_4, %c0_5], %5 {strides = array<i32>} : memref<16x128xf32, #tpu.memory_space<vmem>>, vector<16x128xf32>,
    return
  }
  func.func @transform_0(%arg0: i32, %arg1: i32) -> (i32, i32) {
    %c1_i32 = arith.constant 1 : i32
    %0 = arith.muli %arg0, %c1_i32 : i32
    %1 = arith.addi %0, %arg1 : i32
    %c0_i32 = arith.constant 0 : i32
    %c0_i32_0 = arith.constant 0 : i32
    return %1, %c0_i32 : i32, i32
  }
  func.func @transform_1(%arg0: i32, %arg1: i32) -> (i32, i32) {
    %c0_i32 = arith.constant 0 : i32
    %c0_i32_0 = arith.constant 0 : i32
    return %arg0, %c0_i32 : i32, i32
  }
}

</mosaic_0001>

<bundles_post_ra>
// kernel: tpu_custom_call.1
= control target key start
LH: loop header
LB: loop body
LE: loop exit
PB: predicated region body
PF: predicated region fallthrough
CT: control target
= control target key end

     0   :  { %6 = vsyncpa [#allocation3], 0  ;;  %s151_s0 = inlined_call_operand.hbm [shape: f32[16,128], index: 0, kind: input, shape index: {}]   ;;  %s152_s1 = inlined_call_operand.hbm [shape: f32[16,128], index: 1, kind: output, shape index: {}]  }
   0x1   :  { %7 = vsyncpa [#allocation4], 0  ;;  %s113_s6 = smov [#allocation2]   ;;  %s65_s10 = scalar_lea.hbm %s151_s0, 256 }
   0x2   :  { %s17_s7 = sshll.u32 %s113_s6, 4  ;;  %p66_p0 = scmp.ne.s32.totalorder %s151_s0, %s65_s10  ;;  %s18_s7 = int_to_ptr.vmem [resolvable:$true] %s17_s7 }
   0x3   :  { %p69_p1 = scmp.lt.u32.totalorder %s65_s10, %s151_s0 }
   0x5   :  { %p71_p2 = pnand %p69_p1, %p66_p0 }
   0x7   :  { %74 = shalt.err (!%p71_p2)
}
   0x8   :  { %s75_s15 = scalar_lea.vmem %s18_s7, 256  ;;  %p80_p4 = scmp.lt.s32.totalorder %s18_s7, %s18_s7 }
   0x9   :  { %p76_p3 = scmp.ne.s32.totalorder %s18_s7, %s75_s15  ;;  %p81_p5 = scmp.lt.s32.totalorder %s75_s15, %s75_s15 }
   0xb   :  { %p82_p6 = por %p81_p5, %p80_p4 }
   0xd   :  { %p83_p7 = pnand %p82_p6, %p76_p3 }
   0xf   :  { %86 = shalt.err (!%p83_p7)
}
  0x10   :  { %s114_s16 = smov 128   ;;  %s115_s17 = smov 8  }
  0x11   :  { %23 = dma.hbm_to_vmem [thread:$0]  %s151_s0, 256, %s18_s7, [#allocation3], %s114_s16, %s114_s16, %s115_s17  }
  0x12   :  { %109 = dma.done.wait [#allocation3], 256  }
  0x13   :  { %110 = vsyncadd [#allocation3], 4294967040  ;;  %s116_s20 = smov [#allocation5]   ;;  %v37_v0 = vld [vmem:[#allocation2] sm:$0xff]  ;;  %v38_v1 = vld [vmem:[#allocation2 + $0x8] sm:$0xff] }
  0x14   :  { %s48_s21 = sshll.u32 %s116_s20, 4  ;;  %v39_v2 = vsub.f32 0.0, %v37_v0  ;;  %v40_v3 = vsub.f32 0.0, %v38_v1  ;;  %s49_s21 = int_to_ptr.vmem [resolvable:$true] %s48_s21 }
  0x15   :  { %s87_s22 = scalar_lea.vmem %s49_s21, 256  ;;  %p92_p9 = scmp.lt.s32.totalorder %s49_s21, %s49_s21 }
  0x16   :  { %41 = vst [vmem:[#allocation5] sm:$0xff] %v39_v2  ;;  %42 = vst [vmem:[#allocation5 + $0x8] sm:$0xff] %v40_v3  ;;  %p88_p8 = scmp.ne.s32.totalorder %s49_s21, %s87_s22  ;;  %p93_p10 = scmp.lt.s32.totalorder %s87_s22, %s87_s22 }
  0x18   :  { %p94_p11 = por %p93_p10, %p92_p9 }
  0x1a   :  { %p95_p12 = pnand %p94_p11, %p88_p8 }
  0x1c   :  { %98 = shalt.err (!%p95_p12)
}
  0x1d   :  { %s99_s24 = scalar_lea.hbm %s152_s1, 256 }
  0x1e   :  { %p100_p13 = scmp.ne.s32.totalorder %s152_s1, %s99_s24  ;;  %p103_p0 = scmp.lt.u32.totalorder %s99_s24, %s152_s1 }
  0x20   :  { %p105_p1 = pnand %p103_p0, %p100_p13 }
  0x22   :  { %108 = shalt.err (!%p105_p1)
}
  0x23   :  { %54 = dma.vmem_to_hbm [thread:$0]  %s49_s21, 256, %s152_s1, [#allocation4], %s114_s16, %s114_s16, %s115_s17  }
  0x24   :  { %111 = dma.done.wait [#allocation4], 256  }
  0x25   :  { %112 = vsyncadd [#allocation4], 4294967040 }
  0x26   :  { %58 = vsyncpa [#allocation3], 1 }
  0x27   :  { %59 = vsyncpa [#allocation4], 1 }

</bundles_post_ra>
